<compile_context>
chip_gen: v5e
topology: v5e:2x2
jax: 0.10.0
libtpu: 0.0.40
codegen_flags: <defaults>
</compile_context>

<pallas_src>
import numpy as np
import jax
import jax.numpy as jnp
from jax.experimental import pallas as pl
from jax.experimental.pallas import tpu as pltpu

# --- constants implied by the module -------------------------------------------------
FP = 0.8            # MemoryEfficientTverskyLoss.fp
FN = 0.2            # MemoryEfficientTverskyLoss.fn
SMOOTH = 0.0        # smooth=0 passed in bTverskyLoss.forward
MAIN_CRIT_W = 0.5   # criterion_dict['tversky']['weight']
BLOB_CRIT_W = 0.5   # blob_criterion_dict['tversky']['weight']

MAX_TILE_LANES = 32768   # lanes per spatial tile (x tile = C*TS*4 B; ~512 KiB at C=4)


def _spatial_tiling(S, max_lanes):
    """Choose a lane tile TS (multiple of 128), number of tiles and padded S."""
    s128 = -(-S // 128) * 128
    n_tiles = max(1, -(-s128 // max_lanes))
    ts = -(-s128 // (n_tiles * 128)) * 128
    return ts, n_tiles, ts * n_tiles


# ----------------------------- in-kernel helpers -------------------------------------
def _softmax_c(x):
    """Softmax over the channel axis (dim 1) of a (1, C, TS) tile, f32."""
    m = jnp.max(x, axis=1, keepdims=True)
    e = jnp.exp(x - m)
    return e * pl.reciprocal(jnp.sum(e, axis=1, keepdims=True), approx=True)


def _zero(*refs):
    for r in refs:
        r[...] = jnp.zeros_like(r)


def _tversky_tile_update(p, tgt, valid_f, acc_i, acc_p, acc_g):
    """Accumulate per-class intersect / sum_pred / sum_gt for one spatial tile.

    p:       (1, C, TS) f32 softmax probabilities
    tgt:     (1, 1, TS) int32 per-pixel class index (-1 => padded / no class)
    valid_f: (1, 1, TS) f32 1.0 on real pixels, 0.0 on padding
    """
    cls = jax.lax.broadcasted_iota(jnp.int32, p.shape, 1)        # channel index
    onehot = (cls == tgt).astype(jnp.float32)                    # in-kernel one-hot decode
    acc_i[...] += jnp.sum(p * onehot, axis=2)                    # (1, C)
    acc_p[...] += jnp.sum(p * valid_f, axis=2)                   # (1, C)
    acc_g[...] += jnp.sum(onehot, axis=2)                        # (1, C)


def _finalize(out_ref, acc_i, acc_p, acc_g):
    it = acc_i[...]
    sp = acc_p[...]
    sg = acc_g[...]
    denom = it + FP * sp + FN * sg + SMOOTH                      # exactly as the reference
    out_ref[...] = (1.0 - it / denom)[:, None, :]                # (1, 1, C)


# ----------------------------- Pallas kernels ----------------------------------------
def _tversky_kernel(x_ref, lbl_ref, out_ref, acc_i, acc_p, acc_g):
    """Main Tversky: grid=(B, S_tiles).
    x_ref:   (1, C, TS) logits (any float dtype, upcast to f32)
    lbl_ref: (1, 1, TS) int32 class labels, -1 on padding
    out_ref: (1, 1, C)  per-class 1 - Tversky index (written on last tile only)
    """
    s = pl.program_id(1)

    @pl.when(s == 0)
    def _():
        _zero(acc_i, acc_p, acc_g)

    x = x_ref[...].astype(jnp.float32)
    lbl = lbl_ref[...]
    valid_f = (lbl >= 0).astype(jnp.float32)
    p = _softmax_c(x)
    _tversky_tile_update(p, lbl, valid_f, acc_i, acc_p, acc_g)

    @pl.when(s == pl.num_programs(1) - 1)
    def _():
        _finalize(out_ref, acc_i, acc_p, acc_g)


def _blob_tversky_kernel(owners_ref, blob_ids_ref, x_ref, lbl_ref, out_ref,
                         acc_i, acc_p, acc_g):
    """Per-blob masked Tversky: grid=(NB, S_tiles), logits de-duplicated via owner table.
    owners_ref / blob_ids_ref: (NB,) int32 scalar-prefetch tables (SMEM)
    x_ref:   (1, C, TS) logits of the OWNING batch element
    lbl_ref: (1, 1, TS) int32 connected-component ids of the owning element, -1 padding
    out_ref: (1, 1, C)  per-class 1 - Tversky index for this blob
    """
    n = pl.program_id(0)
    s = pl.program_id(1)

    @pl.when(s == 0)
    def _():
        _zero(acc_i, acc_p, acc_g)

    blob_id = blob_ids_ref[n]
    x = x_ref[...].astype(jnp.float32)
    lbl = lbl_ref[...]
    valid = lbl >= 0
    is_blob = lbl == blob_id
    # keep-mask: background OR the current blob (other blobs' logits are zeroed,
    # exactly like masked_output = element_output * label_mask in the reference).
    keep_f = jnp.logical_or(lbl == 0, is_blob).astype(jnp.float32)
    p = _softmax_c(x * keep_f)
    # binary blob target: channel 1 on the blob, channel 0 elsewhere, -1 on padding.
    tgt = jnp.where(valid, is_blob.astype(jnp.int32), -1)
    _tversky_tile_update(p, tgt, valid.astype(jnp.float32), acc_i, acc_p, acc_g)

    @pl.when(s == pl.num_programs(1) - 1)
    def _():
        _finalize(out_ref, acc_i, acc_p, acc_g)


# ----------------------------- wrappers -----------------------------------------------
def tversky_per_class_losses(x_bcs, lbl_bs, *, max_lanes=MAX_TILE_LANES):
    """MemoryEfficientTverskyLoss per-(batch, class) terms -> (B, C)."""
    B, C, S = x_bcs.shape
    ts, n_s, s_pad = _spatial_tiling(S, max_lanes)
    pad = s_pad - S
    x_p = jnp.pad(x_bcs, ((0, 0), (0, 0), (0, pad)))
    lbl = jnp.pad(lbl_bs.astype(jnp.int32), ((0, 0), (0, pad)),
                  constant_values=-1).reshape(B, 1, s_pad)

    x_map = lambda b, s: (b, 0, s)
    if n_s >= 3:
        x_spec = pl.BlockSpec((1, C, ts), x_map, pipeline_mode=pl.Buffered(3))
    else:
        x_spec = pl.BlockSpec((1, C, ts), x_map)

    out = pl.pallas_call(
        _tversky_kernel,
        out_shape=jax.ShapeDtypeStruct((B, 1, C), jnp.float32),
        grid=(B, n_s),
        in_specs=[x_spec,
                  pl.BlockSpec((1, 1, ts), lambda b, s: (b, 0, s))],
        out_specs=pl.BlockSpec((1, 1, C), lambda b, s: (b, 0, 0)),
        scratch_shapes=[pltpu.VMEM((1, C), jnp.float32),
                        pltpu.VMEM((1, C), jnp.float32),
                        pltpu.VMEM((1, C), jnp.float32)],
        compiler_params=pltpu.CompilerParams(
            dimension_semantics=("parallel", "arbitrary"),
            vmem_limit_bytes=32 * 1024 * 1024),
    )(x_p, lbl)
    return out.reshape(B, C)


def blob_tversky_per_class_losses(x_bcs, multi_lbl_bs, owners, blob_ids,
                                  *, max_lanes=MAX_TILE_LANES):
    """Per-blob masked Tversky per-class terms -> (NB, C). Logits are NOT duplicated."""
    B, C, S = x_bcs.shape
    NB = int(owners.shape[0])
    ts, n_s, s_pad = _spatial_tiling(S, max_lanes)
    pad = s_pad - S
    x_p = jnp.pad(x_bcs, ((0, 0), (0, 0), (0, pad)))
    ml = jnp.pad(multi_lbl_bs.astype(jnp.int32), ((0, 0), (0, pad)),
                 constant_values=-1).reshape(B, 1, s_pad)

    def x_map(n, s, owners_ref, blob_ids_ref):
        return (owners_ref[n], 0, s)

    def lbl_map(n, s, owners_ref, blob_ids_ref):
        return (owners_ref[n], 0, s)

    def out_map(n, s, owners_ref, blob_ids_ref):
        return (n, 0, 0)

    if n_s >= 3:
        x_spec = pl.BlockSpec((1, C, ts), x_map, pipeline_mode=pl.Buffered(3))
    else:
        x_spec = pl.BlockSpec((1, C, ts), x_map)

    grid_spec = pltpu.PrefetchScalarGridSpec(
        num_scalar_prefetch=2,
        grid=(NB, n_s),
        in_specs=[x_spec,
                  pl.BlockSpec((1, 1, ts), lbl_map)],
        out_specs=pl.BlockSpec((1, 1, C), out_map),
        scratch_shapes=[pltpu.VMEM((1, C), jnp.float32),
                        pltpu.VMEM((1, C), jnp.float32),
                        pltpu.VMEM((1, C), jnp.float32)])

    out = pl.pallas_call(
        _blob_tversky_kernel,
        out_shape=jax.ShapeDtypeStruct((NB, 1, C), jnp.float32),
        grid_spec=grid_spec,
        compiler_params=pltpu.CompilerParams(
            dimension_semantics=("parallel", "arbitrary"),
            vmem_limit_bytes=32 * 1024 * 1024),
    )(jnp.asarray(owners, jnp.int32), jnp.asarray(blob_ids, jnp.int32), x_p, ml)
    return out.reshape(NB, C)


# ----------------------------- host-side glue -----------------------------------------
def connected_components_2d(img):
    """skimage/cucim measure.label(): connected regions of equal nonzero value,
    8-connectivity, background 0 -> label 0."""
    # TODO(synk): connected-components labeling (cucim_measure.label) is a
    # data-dependent flood fill with no clean Pallas/TPU equivalent; host numpy BFS.
    H, W = img.shape
    labels = np.zeros((H, W), dtype=np.int64)
    cur = 0
    for i in range(H):
        for j in range(W):
            if img[i, j] != 0 and labels[i, j] == 0:
                cur += 1
                val = img[i, j]
                stack = [(i, j)]
                labels[i, j] = cur
                while stack:
                    a, b = stack.pop()
                    for da in (-1, 0, 1):
                        for db in (-1, 0, 1):
                            na, nb = a + da, b + db
                            if (0 <= na < H and 0 <= nb < W
                                    and labels[na, nb] == 0 and img[na, nb] == val):
                                labels[na, nb] = cur
                                stack.append((na, nb))
    return labels, cur


def b_tversky_loss(x, y, alpha=2.0, beta=1.0, max_lanes=MAX_TILE_LANES):
    """Mirrors bTverskyLoss.forward.
    x: (B, C, H, W) float logits (f32 or bf16); y: (B, 1, H, W) integer labels.
    NOTE: `compute_loss` is not part of the provided source; the canonical blob-loss
    reference (main compound loss + per-blob masked loss, each with criterion weight
    0.5, combined as alpha*main + beta*blob) is reproduced here.
    """
    x = jnp.asarray(x)
    B, C, H, W = x.shape
    S = H * W
    x_bcs = x.reshape(B, C, S)

    # labels are no-grad; squeeze(1), connected components per element
    y_np = np.asarray(y)[:, 0]                                       # (B, H, W)
    multi_label = np.zeros_like(y_np, dtype=np.int64)
    for i in range(B):
        multi_label[i], _ = connected_components_2d(y_np[i])

    # ---------- main loss: 0.5 * Tversky(softmax(x), onehot(y)) -----------------------
    per_class = tversky_per_class_losses(
        x_bcs, jnp.asarray(y_np.reshape(B, S), jnp.int32), max_lanes=max_lanes)
    main_compound = MAIN_CRIT_W * jnp.mean(per_class)

    # ---------- blob loss: per connected component, masked Tversky --------------------
    owners, blob_ids = [], []
    for el in range(B):
        for ula in np.unique(multi_label[el]):
            if ula != 0:
                owners.append(el)
                blob_ids.append(int(ula))

    if owners:
        owners_np = np.asarray(owners, np.int32)
        blob_ids_np = np.asarray(blob_ids, np.int32)
        per_blob_class = blob_tversky_per_class_losses(
            x_bcs, jnp.asarray(multi_label.reshape(B, S), jnp.int32),
            owners_np, blob_ids_np, max_lanes=max_lanes)             # (NB, C)
        per_blob = jnp.mean(per_blob_class, axis=1)                  # Tversky per blob
        element_losses = []
        for el in range(B):
            idx = np.nonzero(owners_np == el)[0]
            if idx.size:
                element_losses.append(jnp.mean(per_blob[jnp.asarray(idx)]))
        blob_compound = BLOB_CRIT_W * (sum(element_losses) / len(element_losses))
    else:
        blob_compound = jnp.float32(0.0)

    # compute_loss: loss = main_weight * main_loss + blob_weight * blob_loss
    return alpha * main_compound + beta * blob_compound


if __name__ == "__main__":
    key = jax.random.PRNGKey(0)
    B, C, H, W = 2, 4, 16, 16
    x = jax.random.normal(key, (B, C, H, W), dtype=jnp.float32)

    # deterministic labels with a few distinct blobs per batch element
    y_np = np.zeros((B, 1, H, W), dtype=np.int32)
    y_np[0, 0, 2:6, 2:6] = 1
    y_np[0, 0, 10:14, 9:13] = 1
    y_np[1, 0, 1:5, 10:15] = 2
    y_np[1, 0, 8:12, 2:6] = 1
    y = jnp.asarray(y_np)

    # max_lanes=128 forces 2 spatial tiles so the accumulator / pl.when init+finalize
    # path is exercised even at this tiny size; compare with the single-tile result.
    loss_tiled = b_tversky_loss(x, y, alpha=2.0, beta=1.0, max_lanes=128)
    loss_whole = b_tversky_loss(x, y, alpha=2.0, beta=1.0)
    jax.block_until_ready(loss_tiled)
    jax.block_until_ready(loss_whole)
    assert np.isfinite(float(loss_tiled)) and np.isfinite(float(loss_whole))
    assert abs(float(loss_tiled) - float(loss_whole)) < 1e-4
    print("KERNEL_OK")
</pallas_src>

<mosaic_0001>
module attributes {stable_mosaic.version = 11 : i64} {
  func.func @_tversky_kernel(%arg0: i32, %arg1: i32, %arg2: memref<1x4x128xf32, #tpu.memory_space<vmem>>, %arg3: memref<1x1x128xi32, #tpu.memory_space<vmem>>, %arg4: memref<1x1x4xf32, #tpu.memory_space<vmem>>, %arg5: memref<1x4xf32, #tpu.memory_space<vmem>>, %arg6: memref<1x4xf32, #tpu.memory_space<vmem>>, %arg7: memref<1x4xf32, #tpu.memory_space<vmem>>) attributes {dimension_semantics = [#tpu.dimension_semantics<parallel>, #tpu.dimension_semantics<arbitrary>], iteration_bounds = array<i64: 2, 2>, scalar_prefetch = 0 : i64, scratch_operands = 3 : i64, tpu.core_type = #tpu.core_type<tc>, window_params = [{transform_indices = @transform_0, window_bounds = array<i64: 1, 4, 128>}, {transform_indices = @transform_1, window_bounds = array<i64: 1, 1, 128>}, {transform_indices = @transform_2, window_bounds = array<i64: 1, 1, 4>}]} {
    %c0_i32 = arith.constant 0 : i32
    %0 = arith.cmpi eq, %arg1, %c0_i32 : i32
    %1 = arith.extui %0 : i1 to i32
    %c0_i32_0 = arith.constant 0 : i32
    %2 = arith.cmpi ne, %1, %c0_i32_0 : i32
    scf.if %2 {
      %cst_24 = arith.constant 0.000000e+00 : f32
      %42 = vector.broadcast %cst_24 : f32 to vector<1x4xf32>
      %c0_25 = arith.constant 0 : index
      %c0_26 = arith.constant 0 : index
      %43 = vector.load %arg5[%c0_25, %c0_26] : memref<1x4xf32, #tpu.memory_space<vmem>>, vector<1x4xf32>
      tpu.vector_store %arg5[%c0_25, %c0_26], %42 {strides = array<i32>} : memref<1x4xf32, #tpu.memory_space<vmem>>, vector<1x4xf32>,
      %cst_27 = arith.constant 0.000000e+00 : f32
      %44 = vector.broadcast %cst_27 : f32 to vector<1x4xf32>
      %c0_28 = arith.constant 0 : index
      %c0_29 = arith.constant 0 : index
      %45 = vector.load %arg6[%c0_28, %c0_29] : memref<1x4xf32, #tpu.memory_space<vmem>>, vector<1x4xf32>
      tpu.vector_store %arg6[%c0_28, %c0_29], %44 {strides = array<i32>} : memref<1x4xf32, #tpu.memory_space<vmem>>, vector<1x4xf32>,
      %cst_30 = arith.constant 0.000000e+00 : f32
      %46 = vector.broadcast %cst_30 : f32 to vector<1x4xf32>
      %c0_31 = arith.constant 0 : index
      %c0_32 = arith.constant 0 : index
      %47 = vector.load %arg7[%c0_31, %c0_32] : memref<1x4xf32, #tpu.memory_space<vmem>>, vector<1x4xf32>
      tpu.vector_store %arg7[%c0_31, %c0_32], %46 {strides = array<i32>} : memref<1x4xf32, #tpu.memory_space<vmem>>, vector<1x4xf32>,
    } else {
    }
    %c0 = arith.constant 0 : index
    %c0_1 = arith.constant 0 : index
    %c0_2 = arith.constant 0 : index
    %3 = vector.load %arg2[%c0, %c0_1, %c0_2] : memref<1x4x128xf32, #tpu.memory_space<vmem>>, vector<1x4x128xf32>
    %c0_3 = arith.constant 0 : index
    %c0_4 = arith.constant 0 : index
    %c0_5 = arith.constant 0 : index
    %4 = vector.load %arg3[%c0_3, %c0_4, %c0_5] : memref<1x1x128xi32, #tpu.memory_space<vmem>>, vector<1x1x128xi32>
    %c0_i32_6 = arith.constant 0 : i32
    %5 = vector.broadcast %c0_i32_6 : i32 to vector<1x1x128xi32>
    %6 = arith.cmpi sge, %4, %5 : vector<1x1x128xi32>
    %7 = arith.extui %6 : vector<1x1x128xi1> to vector<1x1x128xi32>
    %8 = arith.sitofp %7 : vector<1x1x128xi32> to vector<1x1x128xf32>
    %cst = arith.constant dense<0xFF800000> : vector<1x128xf32>
    %9 = vector.multi_reduction <maximumf>, %3, %cst [1] : vector<1x4x128xf32> to vector<1x128xf32>
    %10 = vector.shape_cast %9 : vector<1x128xf32> to vector<1x1x128xf32>
    %11 = vector.broadcast %10 : vector<1x1x128xf32> to vector<1x4x128xf32>
    %12 = arith.subf %3, %11 : vector<1x4x128xf32>
    %13 = math.exp %12 : vector<1x4x128xf32>
    %cst_7 = arith.constant dense<0.000000e+00> : vector<1x128xf32>
    %14 = vector.multi_reduction <add>, %13, %cst_7 [1] : vector<1x4x128xf32> to vector<1x128xf32>
    %15 = vector.shape_cast %14 : vector<1x128xf32> to vector<1x1x128xf32>
    %16 = tpu.reciprocal %15 {approx = true} : vector<1x1x128xf32> -> vector<1x1x128xf32>
    %17 = vector.broadcast %16 : vector<1x1x128xf32> to vector<1x4x128xf32>
    %18 = arith.mulf %13, %17 : vector<1x4x128xf32>
    %19 = tpu.iota {dimensions = array<i32: 1>} : vector<1x4x128xi32>
    %20 = vector.broadcast %4 : vector<1x1x128xi32> to vector<1x4x128xi32>
    %21 = arith.cmpi eq, %19, %20 : vector<1x4x128xi32>
    %22 = arith.extui %21 : vector<1x4x128xi1> to vector<1x4x128xi32>
    %23 = arith.sitofp %22 : vector<1x4x128xi32> to vector<1x4x128xf32>
    %c0_8 = arith.constant 0 : index
    %c0_9 = arith.constant 0 : index
    %24 = vector.load %arg5[%c0_8, %c0_9] : memref<1x4xf32, #tpu.memory_space<vmem>>, vector<1x4xf32>
    %25 = arith.mulf %18, %23 : vector<1x4x128xf32>
    %cst_10 = arith.constant dense<0.000000e+00> : vector<1x4xf32>
    %26 = vector.multi_reduction <add>, %25, %cst_10 [2] : vector<1x4x128xf32> to vector<1x4xf32>
    %27 = arith.addf %24, %26 : vector<1x4xf32>
    %c0_11 = arith.constant 0 : index
    %c0_12 = arith.constant 0 : index
    %28 = vector.load %arg5[%c0_11, %c0_12] : memref<1x4xf32, #tpu.memory_space<vmem>>, vector<1x4xf32>
    tpu.vector_store %arg5[%c0_11, %c0_12], %27 {strides = array<i32>} : memref<1x4xf32, #tpu.memory_space<vmem>>, vector<1x4xf32>,
    %c0_13 = arith.constant 0 : index
    %c0_14 = arith.constant 0 : index
    %29 = vector.load %arg6[%c0_13, %c0_14] : memref<1x4xf32, #tpu.memory_space<vmem>>, vector<1x4xf32>
    %30 = vector.broadcast %8 : vector<1x1x128xf32> to vector<1x4x128xf32>
    %31 = arith.mulf %18, %30 : vector<1x4x128xf32>
    %cst_15 = arith.constant dense<0.000000e+00> : vector<1x4xf32>
    %32 = vector.multi_reduction <add>, %31, %cst_15 [2] : vector<1x4x128xf32> to vector<1x4xf32>
    %33 = arith.addf %29, %32 : vector<1x4xf32>
    %c0_16 = arith.constant 0 : index
    %c0_17 = arith.constant 0 : index
    %34 = vector.load %arg6[%c0_16, %c0_17] : memref<1x4xf32, #tpu.memory_space<vmem>>, vector<1x4xf32>
    tpu.vector_store %arg6[%c0_16, %c0_17], %33 {strides = array<i32>} : memref<1x4xf32, #tpu.memory_space<vmem>>, vector<1x4xf32>,
    %c0_18 = arith.constant 0 : index
    %c0_19 = arith.constant 0 : index
    %35 = vector.load %arg7[%c0_18, %c0_19] : memref<1x4xf32, #tpu.memory_space<vmem>>, vector<1x4xf32>
    %cst_20 = arith.constant dense<0.000000e+00> : vector<1x4xf32>
    %36 = vector.multi_reduction <add>, %23, %cst_20 [2] : vector<1x4x128xf32> to vector<1x4xf32>
    %37 = arith.addf %35, %36 : vector<1x4xf32>
    %c0_21 = arith.constant 0 : index
    %c0_22 = arith.constant 0 : index
    %38 = vector.load %arg7[%c0_21, %c0_22] : memref<1x4xf32, #tpu.memory_space<vmem>>, vector<1x4xf32>
    tpu.vector_store %arg7[%c0_21, %c0_22], %37 {strides = array<i32>} : memref<1x4xf32, #tpu.memory_space<vmem>>, vector<1x4xf32>,
    %c1_i32 = arith.constant 1 : i32
    %39 = arith.cmpi eq, %arg1, %c1_i32 : i32
    %40 = arith.extui %39 : i1 to i32
    %c0_i32_23 = arith.constant 0 : i32
    %41 = arith.cmpi ne, %40, %c0_i32_23 : i32
    scf.if %41 {
      %c0_24 = arith.constant 0 : index
      %c0_25 = arith.constant 0 : index
      %42 = vector.load %arg5[%c0_24, %c0_25] : memref<1x4xf32, #tpu.memory_space<vmem>>, vector<1x4xf32>
      %c0_26 = arith.constant 0 : index
      %c0_27 = arith.constant 0 : index
      %43 = vector.load %arg6[%c0_26, %c0_27] : memref<1x4xf32, #tpu.memory_space<vmem>>, vector<1x4xf32>
      %c0_28 = arith.constant 0 : index
      %c0_29 = arith.constant 0 : index
      %44 = vector.load %arg7[%c0_28, %c0_29] : memref<1x4xf32, #tpu.memory_space<vmem>>, vector<1x4xf32>
      %cst_30 = arith.constant 8.000000e-01 : f32
      %45 = vector.broadcast %cst_30 : f32 to vector<1x4xf32>
      %46 = arith.mulf %45, %43 : vector<1x4xf32>
      %47 = arith.addf %42, %46 : vector<1x4xf32>
      %cst_31 = arith.constant 2.000000e-01 : f32
      %48 = vector.broadcast %cst_31 : f32 to vector<1x4xf32>
      %49 = arith.mulf %48, %44 : vector<1x4xf32>
      %50 = arith.addf %47, %49 : vector<1x4xf32>
      %cst_32 = arith.constant 0.000000e+00 : f32
      %51 = vector.broadcast %cst_32 : f32 to vector<1x4xf32>
      %52 = arith.addf %50, %51 : vector<1x4xf32>
      %53 = arith.divf %42, %52 : vector<1x4xf32>
      %cst_33 = arith.constant 1.000000e+00 : f32
      %54 = vector.broadcast %cst_33 : f32 to vector<1x4xf32>
      %55 = arith.subf %54, %53 : vector<1x4xf32>
      %56 = vector.shape_cast %55 : vector<1x4xf32> to vector<1x1x4xf32>
      %c0_34 = arith.constant 0 : index
      %c0_35 = arith.constant 0 : index
      %c0_36 = arith.constant 0 : index
      %57 = vector.load %arg4[%c0_34, %c0_35, %c0_36] : memref<1x1x4xf32, #tpu.memory_space<vmem>>, vector<1x1x4xf32>
      tpu.vector_store %arg4[%c0_34, %c0_35, %c0_36], %56 {strides = array<i32>} : memref<1x1x4xf32, #tpu.memory_space<vmem>>, vector<1x1x4xf32>,
    } else {
    }
    return
  }
  func.func @transform_0(%arg0: i32, %arg1: i32) -> (i32, i32, i32) {
    %c0_i32 = arith.constant 0 : i32
    %c0_i32_0 = arith.constant 0 : i32
    return %arg0, %c0_i32, %arg1 : i32, i32, i32
  }
  func.func @transform_1(%arg0: i32, %arg1: i32) -> (i32, i32, i32) {
    %c0_i32 = arith.constant 0 : i32
    %c0_i32_0 = arith.constant 0 : i32
    return %arg0, %c0_i32, %arg1 : i32, i32, i32
  }
  func.func @transform_2(%arg0: i32, %arg1: i32) -> (i32, i32, i32) {
    %c0_i32 = arith.constant 0 : i32
    %c0_i32_0 = arith.constant 0 : i32
    %c0_i32_1 = arith.constant 0 : i32
    return %arg0, %c0_i32, %c0_i32_0 : i32, i32, i32
  }
}

</mosaic_0001>

<bundles_post_ra>
// kernel: tpu_custom_call.1
= control target key start
LH: loop header
LB: loop body
LE: loop exit
PB: predicated region body
PF: predicated region fallthrough
CT: control target
= control target key end

     0   :  { %7 = vsyncpa [#allocation6], 0  ;;  %s1030_s0 = inlined_call_operand.hbm [shape: f32[2,4,256], index: 0, kind: input, shape index: {}]   ;;  %s1031_s1 = inlined_call_operand.hbm [shape: s32[2,1,256], index: 1, kind: input, shape index: {}]   ;;  %s1032_s2 = inlined_call_operand.hbm [shape: f32[2,1,4], index: 2, kind: output, shape index: {}]  }
   0x1   :  { %9 = vsyncpa [#allocation6 + $0x1], 0 }
   0x2   :  { %10 = vsyncpa [#allocation9], 0 }
   0x3   :  { %12 = vsyncpa [#allocation9 + $0x1], 0 }
   0x4   :  { %13 = vsyncpa [#allocation7], 0 }
   0x5   :  { %15 = vsyncpa [#allocation7 + $0x1], 0  ;;  %s818_s9 = smov 0   ;;  %s820_s10 = smov 0  }
   0x6   :  { %s822_s11 = smov 0   ;;  %s824_s12 = smov 0  }
   0x7   :  { %s826_s13 = smov 0   ;;  %s828_s14 = smov 0  }
   0x8   :  { %s830_s15 = smov 0   ;;  %s832_s16 = smov 0  }
   0x9   :  { %s834_s17 = smov 0   ;;  %s836_s18 = smov 0  }
   0xa   :  { %s838_s19 = smov 0  }
   0xb LB: > { %1036 = sst [smem:[#allocation14_spill]] %s794_s18  ;;  %s476_s20 = sadd.s32 4294967295, %s798_s19   ;;  %s798_s19 = sphi %s838_s19, %s21_s19   ;;  %s794_s18 = sphi %s836_s18, %s1046_s18   ;;  %s790_s17 = sphi %s834_s17, %s1054_s17   ;;  %s786_s16 = sphi %s832_s16, %s1044_s16   ;;  %s782_s15 = sphi %s830_s15, %s1053_s15   ;;  %s778_s14 = sphi %s828_s14, %s1052_s14   ;;  %s774_s13 = sphi %s826_s13, %s1051_s13   ;;  %s770_s12 = sphi %s824_s12, %s1050_s12   ;;  %s766_s11 = sphi %s822_s11, %s1049_s11   ;;  %s762_s10 = sphi %s820_s10, %s1048_s10   ;;  %s758_s9 = sphi %s818_s9, %s1047_s9  }
   0xc   : > { %s477_s21 = sadd.s32 4294967294, %s798_s19   ;;  %s30_s22 = sadd.s32 1, %s790_s17 }
   0xd   : > { %s33_s23 = sadd.s32 1, %s794_s18  ;;  %p31_p0 = scmp.ge.s32.totalorder %s30_s22, 2 }
   0xe   : > { %s42_s24 = sadd.s32 1, %s778_s14  ;;  %p49_p1 = scmp.ne.s32.totalorder %s778_s14, %s774_s13 }
   0xf   : > { %p50_p2 = scmp.eq.s32.totalorder %s798_s19, 0  ;;  %s1056_s22 = smov (%p31_p0, %s30_s22), 0 }
  0x10   : > { %1037 = sst [smem:[#allocation15_spill]] %s1056_s22  ;;  %s1058_s23 = smov (!%p31_p0, %s33_s23), %s794_s18 }
  0x11   : > { %s38_s25 = ssub.s32 %s790_s17, %s1056_s22  ;;  %p884_p3 = por %p50_p2, %p49_p1 }
  0x12   : > { %p35_p4 = scmp.ge.s32.totalorder %s1058_s23, 2  ;;  %p55_p5 = scmp.ne.s32.totalorder %s774_s13, %s770_s12 }
  0x13   : > { %p56_p6 = scmp.eq.s32.totalorder %s476_s20, 0  ;;  %s96_s27 = sadd.s32 1, %s766_s11 }
  0x14   : > { %s1060_s23 = smov (%p35_p4, %s1058_s23), 0  ;;  %p106_p8 = scmp.ne.s32.totalorder %s766_s11, %s762_s10 }
  0x15   : > { %1039 = sst [smem:[#allocation16_spill]] %s1060_s23  ;;  %p892_p7 = por %p56_p6, %p55_p5 }
  0x16   : > { %s37_s29 = ssub.s32 %s794_s18, %s1060_s23  ;;  %p107_p9 = scmp.eq.s32.totalorder %s476_s20, 3 }
  0x17   : > { %s39_s30 = sor.u32 %s38_s25, %s37_s29  ;;  %p94_p10 = scmp.eq.s32.totalorder %s37_s29, 0 }
  0x18   : > { %p40_p11 = scmp.eq.s32.totalorder %s39_s30, 0  ;;  %p900_p12 = por %p107_p9, %p106_p8 }
  0x19   : > { %s905_s4 = scalar_select %p94_p10, %s766_s11, %s96_s27  }
  0x1a   : > { %s908_s5 = scalar_select %p40_p11, %s778_s14, %s42_s24  }
  0x1b   : > { %p112_p13 = scmp.ne.s32.totalorder %s762_s10, %s758_s9  ;;  %p113_p0 = scmp.eq.s32.totalorder %s477_s21, 3 }
  0x1c   : > { %p509_p1 = scmp.lt.s32.totalorder %s798_s19, 4  ;;  %s133_s7 = sand.u32 1, %s778_s14  }
  0x1d   : > { %p913_p2 = por %p113_p0, %p112_p13  ;;  %s480_s8 = sshll.u32 %s133_s7, 2 }
  0x1e   : > { %s481_s12 = sshll.u32 %s794_s18, 1  ;;  %s137_s25 = scalar_lea.vmem [#allocation5], %s480_s8 }
  0x1f   : > { %s141_s20 = sadd.s32 %s790_s17, %s481_s12  ;;  %s147_s29 = sshll.u32 %s137_s25, 4  ;;  %s148_s29 = int_to_ptr.vmem [resolvable:$true] %s147_s29 }
  0x20   : > { %s482_s30 = sshll.u32 %s141_s20, 2  ;;  %p925_p4 = pnand %p509_p1, %p884_p3 }
  0x21   : > { %s143_s23 = scalar_lea.hbm %s1030_s0, %s482_s30  ;;  %p484_p5 = scmp.ge.s32.totalorder %s798_s19, 1 }
  0x22   : > { %s145_s22 = sshll.u32 %s143_s23, 4  ;;  %s134_s18 = scalar_lea.sflag [#allocation6], %s133_s7  ;;  %s146_s22 = int_to_ptr.hbm [resolvable:$true] %s145_s22 }
  0x23   : > { %501 = dma.hbm_to_vmem [thread:$0]  (!%p925_p4), %s146_s22, 64, %s148_s29, %s134_s18  }
  0x24   : > { %p171_p6 = scmp.lt.s32.totalorder %s798_s19, 5  ;;  %s162_s25 = scalar_lea.hbm %s1031_s1, %s141_s20 }
  0x25   : > { %s164_s30 = sshll.u32 %s162_s25, 4  ;;  %s157_s26 = scalar_lea.vmem [#allocation8], %s133_s7  ;;  %s165_s30 = int_to_ptr.hbm [resolvable:$true] %s164_s30 }
  0x26   : > { %p172_p8 = pnand %p484_p5, %p171_p6  ;;  %s166_s27 = sshll.u32 %s157_s26, 4  ;;  %s167_s27 = int_to_ptr.vmem [resolvable:$true] %s166_s27 }
  0x27   : > { %s155_s24 = scalar_lea.sflag [#allocation9], %s133_s7  ;;  %s939_s23 = sand.u32 (!%p172_p8), 1, %s774_s13  }
  0x28   : > { %504 = dma.hbm_to_vmem [thread:$0]  (!%p925_p4), %s165_s30, 16, %s167_s27, %s155_s24  }
  0x29   : > { %175 = sbr.rel (%p172_p8) target bundleno = 406 (0x196), region = 28  ;;  %s485_s18 = sshll.u32 (!%p172_p8), %s939_s23, 2 }
  0x2a   : > { %s178_s22 = scalar_lea.sflag (!%p172_p8), [#allocation6], %s939_s23  ;;  %s181_s29 = scalar_lea.vmem (!%p172_p8), [#allocation5], %s485_s18 }
  0x2e   : > { %745 = dma.done.wait (%p892_p7), %s178_s22, 64  }
  0x2f   : > { %747 = vsyncadd (%p892_p7), %s178_s22, 4294967232  ;;  %s188_s7 = scalar_lea.sflag [#allocation9], %s939_s23  ;;  %s190_s20 = scalar_lea.vmem [#allocation8], %s939_s23 }
  0x30   : > { %749 = dma.done.wait (%p892_p7), %s188_s7, 16  }
  0x31   : > { %751 = vsyncadd (%p892_p7), %s188_s7, 4294967280  ;;  %s213_s21 = sand.u32 1, %s762_s10   ;;  %p486_p3 = scmp.ne.s32.totalorder %s782_s15, 0 }
  0x32   : > { %s956_s8 = scalar_lea.vmem [#allocation10], %s213_s21 }
  0x33   : > { %218 = sbr.rel (%p486_p3) target bundleno = 60 (0x3c), region = 40 }
  0x38   : > { %vm219_vm0 = vcmask 24576   ;;  %v800_v0 = vmov 0.0  }
  0x39   : > { %220 = vst.msk [vmem:[#allocation2] sm:$0x1] %vm219_vm0, %v800_v0 }
  0x3a   : > { %221 = vst.msk [vmem:[#allocation3] sm:$0x1] %vm219_vm0, %v800_v0 }
  0x3b   : > { %222 = vst.msk [vmem:[#allocation4] sm:$0x1] %vm219_vm0, %v800_v0 }
  0x3c PF: > { %v223_v1 = vld [vmem:[%s181_s29] sm:$0xf]  ;;  %vm228_vm1 = vcmask 1043456   ;;  %v248_v10 = vlaneseq  ;;  %v605_v13 = vld [vmem:[%s190_s20] ss:$0 sm:$0xff]  ;;  %v801_v16 = vmov 0.0  }
  0x3d   : > { %v229_v2 = vsel %vm228_vm1, %v223_v1, -inf  ;;  %v224_v25 = vld [vmem:[%s190_s20] sm:$0x1]  ;;  %v802_v34 = vmov 0   ;;  %vm280_vm4 = vcmask 24576   ;;  %p489_p7 = scmp.ne.s32.totalorder %s782_s15, 1 }
  0x3e   : > { %v230_v3 = vrot.slane %v229_v2, 4  ;;  %v249_v12 = vshrl.u32 %v248_v10, 7  ;;  %vm225_vm3 = vcmp.ge.s32.totalorder %v224_v25, 0  ;;  %602 = vset.pattern.permute.xlu1 %v802_v34  ;;  %603 = vset.pattern.permute.xlu2 %v802_v34  ;;  %v276_v53 = vand.u32 127, %v248_v10 }
  0x3f   : > { %v487_v27 = vsel %vm225_vm3, 1.0, %v801_v16  ;;  %604 = vset.pattern.permute.xlu0 %v802_v34 }
  0x40   : > { %v231_v4 = vmax.f32 %v229_v2, %v230_v3  ;;  %vm251_vm2 = vcmp.eq.s32.totalorder %v249_v12, %v605_v13  ;;  %v284_v30 = vperm.slane %v487_v27, 0  ;;  %v254_v61 = vld [vmem:[#allocation2] sm:$0x1] }
  0x41   : > { %v488_v17 = vsel %vm251_vm2, 1.0, %v801_v16  ;;  %v282_v54 = vld [vmem:[#allocation3] sm:$0x1] }
  0x42   : > { %v232_v5 = vrot.slane %v231_v4, 2  ;;  %v311_v19 = vsel %vm228_vm1, %v488_v17, 0.0  ;;  %v310_v58 = vld [vmem:[#allocation4] sm:$0x1] }
  0x43   : > { %312 = vadd.xlane.f32.xlu1 %v311_v19 }
  0x44   : > { %v233_v6 = vmax.f32 %v231_v4, %v232_v5 }
  0x46   : > { %v234_v7 = vrot.slane %v233_v6, 1 }
  0x48   : > { %v235_v8 = vmax.f32 %v233_v6, %v234_v7 }
  0x4a   : > { %v236_v9 = vsub.f32 %v223_v1, %v235_v8 }
  0x4c   : > { %v237_v11 = vmul.f32 1.442695, %v236_v9 }
  0x4e   : > { %606 = vpow2.f32 %v237_v11 }
  0x54   : > { %v607_v14 = vpop.eup %606 }
  0x55   : > { %v239_v15 = vsel %vm228_vm1, %v607_v14, 0.0 }
  0x56   : > { %v240_v18 = vrot.slane %v239_v15, 4 }
  0x58   : > { %v241_v20 = vadd.f32 %v240_v18, %v239_v15 }
  0x5a   : > { %v242_v21 = vrot.slane %v241_v20, 2 }
  0x5c   : > { %v243_v22 = vadd.f32 %v242_v21, %v241_v20 }
  0x5e   : > { %v244_v23 = vrot.slane %v243_v22, 1 }
  0x60   : > { %v245_v24 = vadd.f32 %v244_v23, %v243_v22 }
  0x62   : > { %608 = vrcp.f32 %v245_v24 }
  0x68   : > { %v609_v26 = vpop.eup %608 }
  0x69   : > { %v247_v28 = vmul.f32 %v609_v26, %v607_v14 }
  0x6b   : > { %v255_v29 = vmul.f32 %v488_v17, %v247_v28  ;;  %v286_v32 = vmul.f32 %v284_v30, %v247_v28 }
  0x6d   : > { %v256_v31 = vsel %vm228_vm1, %v255_v29, 0.0  ;;  %v287_v33 = vsel %vm228_vm1, %v286_v32, 0.0 }
  0x6e   : > { %257 = vadd.xlane.f32.xlu0 %v256_v31 }
  0x76   : > { %288 = vadd.xlane.f32.xlu0 %v287_v33 }
  0xb6   : > { %v313_v46 = vpop.xlane.xlu1 %312 }
  0xb7   : > { %v315_v47 = vperm.slane %v313_v46, 0  ;;  %v316_v48 = vperm.slane %v313_v46, 1  ;;  %v317_v49 = vperm.slane %v313_v46, 2  ;;  %v318_v50 = vperm.slane %v313_v46, 3 }
  0xe1   : > { %v258_v35 = vpop.xlane.xlu0 %257 }
  0xe2   : > { %v260_v36 = vperm.slane %v258_v35, 0  ;;  %v261_v37 = vperm.slane %v258_v35, 1  ;;  %v262_v38 = vperm.slane %v258_v35, 2  ;;  %v263_v39 = vperm.slane %v258_v35, 3 }
  0xe4   : > { %264 = vst [vmem:[#allocation1] ss:$9 sm:$0xff] %v260_v36 }
  0xe5   : > { %266 = vst [vmem:[#allocation1 + $0x1] ss:$9 sm:$0xff] %v261_v37 }
  0xe6   : > { %268 = vst [vmem:[#allocation1 + $0x2] ss:$9 sm:$0xff] %v262_v38 }
  0xe7   : > { %270 = vst [vmem:[#allocation1 + $0x3] ss:$9 sm:$0xff] %v263_v39 }
  0xe9   : > { %v289_v40 = vpop.xlane.xlu0 %288 }
  0xea   : > { %v291_v41 = vperm.slane %v289_v40, 0  ;;  %v292_v42 = vperm.slane %v289_v40, 1  ;;  %v293_v43 = vperm.slane %v289_v40, 2  ;;  %v294_v45 = vperm.slane %v289_v40, 3 }
  0xee   : > { %v271_v44 = vld [vmem:[#allocation1] sm:$0xff] }
  0xef   : > { %295 = vst [vmem:[#allocation1] ss:$9 sm:$0xff] %v291_v41  ;;  %273 = vperm.xlu1 %602, %v271_v44  }
  0xf0   : > { %297 = vst [vmem:[#allocation1 + $0x1] ss:$9 sm:$0xff] %v292_v42 }
  0xf1   : > { %299 = vst [vmem:[#allocation1 + $0x2] ss:$9 sm:$0xff] %v293_v43 }
  0xf2   : > { %301 = vst [vmem:[#allocation1 + $0x3] ss:$9 sm:$0xff] %v294_v45 }
  0xf9   : > { %v302_v51 = vld [vmem:[#allocation1] sm:$0xff] }
  0xfa   : > { %304 = vperm.xlu2 %603, %v302_v51   ;;  %319 = vst [vmem:[#allocation1] ss:$9 sm:$0xff] %v315_v47 }
  0xfb   : > { %321 = vst [vmem:[#allocation1 + $0x1] ss:$9 sm:$0xff] %v316_v48 }
  0xfc   : > { %323 = vst [vmem:[#allocation1 + $0x2] ss:$9 sm:$0xff] %v317_v49 }
  0xfd   : > { %325 = vst [vmem:[#allocation1 + $0x3] ss:$9 sm:$0xff] %v318_v50 }
 0x104   : > { %v326_v52 = vld [vmem:[#allocation1] sm:$0xff] }
 0x105   : > { %328 = vperm.xlu2 %603, %v326_v52  }
 0x154   : > { %v305_v55 = vpop.permute.xlu2 %304 }
 0x155   : > { %v306_v56 = vperm.slane %v305_v55, %v276_v53 }
 0x157   : > { %v308_v57 = vadd.f32 %v306_v56, %v282_v54 }
 0x159   : > { %309 = vst.msk [vmem:[#allocation3] sm:$0x1] %vm280_vm4, %v308_v57 }
 0x15f   : > { %v329_v59 = vpop.permute.xlu2 %328 }
 0x160   : > { %v330_v60 = vperm.slane %v329_v59, %v276_v53 }
 0x161   : > { %v274_v62 = vpop.permute.xlu1 %273 }
 0x162   : > { %v332_v63 = vadd.f32 %v330_v60, %v310_v58  ;;  %v277_v0 = vperm.slane %v274_v62, %v276_v53  ;;  %337 = sbr.rel (%p489_p7) target bundleno = 392 (0x188), region = 44 }
 0x164   : > { %333 = vst.msk [vmem:[#allocation4] sm:$0x1] %vm280_vm4, %v332_v63  ;;  %v279_v1 = vadd.f32 %v277_v0, %v254_v61 }
 0x166   : > { %281 = vst.msk [vmem:[#allocation2] sm:$0x1] %vm280_vm4, %v279_v1 }
 0x167   : > { %v339_v3 = vld [vmem:[#allocation3] sm:$0x1] }
 0x168   : > { %v341_v5 = vmul.f32 0.8, %v339_v3 }
 0x16b   : > { %v340_v4 = vld [vmem:[#allocation4] sm:$0x1] }
 0x16c   : > { %v343_v6 = vmul.f32 0.2, %v340_v4 }
 0x16d   : > { %v338_v2 = vld [vmem:[#allocation2] sm:$0x1] }
 0x16e   : > { %v342_v7 = vadd.f32 %v341_v5, %v338_v2 }
 0x170   : > { %v344_v8 = vadd.f32 %v343_v6, %v342_v7 }
 0x172   : > { %610 = vrcp.f32 %v344_v8  ;;  %v357_v11 = vand.u32 2147483648, %v344_v8  ;;  %vm351_vm5 = vweird.f32 %v344_v8  ;;  %v355_v13 = vand.u32 2147483647, %v344_v8 }
 0x174   : > { %v358_v15 = vor.u32 1.1754944e-38, %v357_v11  ;;  %vm356_vm8 = vcmp.eq.f32.partialorder %v355_v13, 8.507059e+37 }
 0x178   : > { %v611_v9 = vpop.eup %610 }
 0x179   : > { %v347_v10 = vmul.f32 %v611_v9, %v344_v8  ;;  %vm352_vm6 = vweird.f32 %v611_v9 }
 0x17a   : > { %vm353_vm7 = vmor %vm351_vm5, %vm352_vm6 }
 0x17b   : > { %v348_v12 = vsub.f32 1.0, %v347_v10 }
 0x17d   : > { %v349_v14 = vmul.f32 %v611_v9, %v348_v12 }
 0x17f   : > { %v350_v16 = vadd.f32 %v611_v9, %v349_v14 }
 0x181   : > { %v354_v17 = vsel %vm353_vm7, %v611_v9, %v350_v16 }
 0x182   : > { %v359_v18 = vsel %vm356_vm8, %v358_v15, %v354_v17 }
 0x183   : > { %v360_v19 = vmul.f32 %v359_v18, %v338_v2 }
 0x185   : > { %v361_v20 = vsub.f32 1.0, %v360_v19 }
 0x187   : > { %362 = vst.msk [vmem:[%s956_s8] sm:$0x1] %vm280_vm4, %v361_v20 }
 0x188 PF: > { %s372_s12 = scalar_lea.hbm %s1032_s2, %s786_s16  ;;  %s374_s25 = sshll.u32 %s956_s8, 4  ;;  %s375_s25 = int_to_ptr.vmem [resolvable:$true] %s374_s25 }
 0x189   : > { %s376_s30 = sshll.u32 %s372_s12, 4  ;;  %s364_s26 = scalar_lea.sflag [#allocation7], %s213_s21  ;;  %s377_s30 = int_to_ptr.hbm [resolvable:$true] %s376_s30 }
 0x18a   : > { %s686_s27 = sshra.s32 %s377_s30, 4  ;;  %s692_s22 = scalar_lea.hbm %s1032_s2, 2  ;;  %s687_s27 = int_to_ptr.hbm [resolvable:$true] %s686_s27 }
 0x18b   : > { %s688_s24 = scalar_lea.hbm %s687_s27, 1  ;;  %p693_p13 = scmp.lt.s32.totalorder %s687_s27, %s1032_s2 }
 0x18c   : > { %p689_p9 = scmp.ne.s32.totalorder %s687_s27, %s688_s24  ;;  %p694_p0 = scmp.lt.s32.totalorder %s692_s22, %s688_s24 }
 0x18e   : > { %p690_p10 = pnand %p689_p9, %p900_p12  ;;  %p695_p1 = por %p694_p0, %p693_p13 }
 0x190   : > { %p691_p11 = pneg %p690_p10 }
 0x192   : > { %p696_p4 = pnand %p695_p1, %p691_p11 }
 0x194   : > { %699 = shalt.err (!%p696_p4)
}
 0x195   : > { %496 = dma.vmem_to_hbm [thread:$0]  (%p900_p12), %s375_s25, 16, %s377_s30, %s364_s26  }
 0x196 PF: > { %p510_p5 = scmp.ge.s32.totalorder %s798_s19, 2  ;;  %s388_s16 = sand.u32 1, %s758_s9  }
 0x197   : > { %s389_s20 = scalar_lea.sflag [#allocation7], %s388_s16 }
 0x198   : > { %p506_p6 = pnand %p510_p5, %p913_p2 }
 0x19a   : > { %p507_p8 = pneg %p506_p6 }
 0x19c   : > { %753 = dma.done.wait (%p507_p8), %s389_s20, 16  }
 0x19d   : > { %755 = vsyncadd (%p507_p8), %s389_s20, 4294967280  ;;  %s21_s19 = sadd.s32 1, %s798_s19   ;;  %s1044_s16 = sld [smem:[#allocation14_spill]] }
 0x19e   : > { %p18_p3 = scmp.ge.s32.totalorder %s21_s19, 6   ;;  %s1045_s3 = sld [smem:[#allocation15_spill]] }
 0x19f   : > { %s1046_s18 = sld [smem:[#allocation16_spill]]  ;;  %s1047_s9 = smov %s762_s10 }
 0x1a0   : > { %s1048_s10 = smov %s766_s11  ;;  %s1049_s11 = smov %s905_s4 }
 0x1a1   : > { %s1050_s12 = smov %s774_s13  ;;  %s1051_s13 = smov %s778_s14 }
 0x1a2   : > { %s1052_s14 = smov %s908_s5  ;;  %s1053_s15 = smov %s790_s17 }
 0x1a3   :  { %20 = sbr.rel (!%p18_p3) target bundleno = 11 (0xb), region = 103 }
 0x1a4   : > { %s1054_s17 = smov %s1045_s3 }
 0x1a8   :  { %394 = vsyncpa [#allocation6], 1 }
 0x1a9   :  { %396 = vsyncpa [#allocation6 + $0x1], 1 }
 0x1aa   :  { %397 = vsyncpa [#allocation9], 1 }
 0x1ab   :  { %399 = vsyncpa [#allocation9 + $0x1], 1 }
 0x1ac   :  { %400 = vsyncpa [#allocation7], 1 }
 0x1ad   :  { %402 = vsyncpa [#allocation7 + $0x1], 1 }

</bundles_post_ra>
